<compile_context>
chip_gen: v7x
topology: tpu7x:2x2x1
jax: 0.10.0
libtpu: 0.0.40
codegen_flags: <defaults>
</compile_context>

<pallas_src>
import functools

import jax
import jax.numpy as jnp
from jax.experimental import pallas as pl
from jax.experimental.pallas import tpu as pltpu


def _ffn_kernel(x_ref, wt_ref, b_ref, o_ref):
    # x_ref:  (tm, tk)   wt_ref: (tk, tn)  (pre-transposed weight, standard
    # MXU orientation — no per-tile transpose)
    # b_ref:  (1, tn)    o_ref:  (tm, tn) f32 (doubles as the accumulator)
    k = pl.program_id(2)

    @pl.when(k == 0)
    def _():
        o_ref[...] = jnp.zeros_like(o_ref)

    # Accumulate straight into the VMEM-resident output tile.
    o_ref[...] += jnp.dot(x_ref[...], wt_ref[...],
                          preferred_element_type=jnp.float32)

    @pl.when(k == pl.num_programs(2) - 1)
    def _():
        o_ref[...] = jnp.maximum(o_ref[...] + b_ref[...], 0.0)


def _round_up(x, m):
    return ((x + m - 1) // m) * m


@functools.partial(jax.jit, static_argnames=("tm", "tn", "tk"))
def bw_feedforward1(x, weight, bias, *, tm=512, tn=512, tk=2048):
    """ReLU(x @ weight.T + bias).

    x:      (M, K) f32
    weight: (N, K) f32  (PyTorch nn.Linear layout)
    bias:   (N,)   f32
    """
    M, K = x.shape
    N, K2 = weight.shape
    assert K == K2, "weight inner dim must match x"

    x = x.astype(jnp.float32)
    # One-time (K, N) layout change for the persistent parameter: lets the
    # kernel contract on the sublane dim of W without XLU transposes.
    wt = weight.astype(jnp.float32).T
    bias = bias.astype(jnp.float32)

    # Clamp tiles to the (padded) problem size, keeping (8,128) alignment.
    tm = min(tm, _round_up(M, 8))
    tn = min(tn, _round_up(N, 128))
    tk = min(tk, _round_up(K, 128))

    Mp, Np, Kp = _round_up(M, tm), _round_up(N, tn), _round_up(K, tk)

    # Zero-pad to tile multiples (zeros contribute nothing to the matmul;
    # padded rows/cols are sliced off at the end). For typical aligned NN
    # shapes no padding copy is made.
    if (Mp, Kp) != (M, K):
        x = jnp.pad(x, ((0, Mp - M), (0, Kp - K)))
    if (Kp, Np) != (K, N):
        wt = jnp.pad(wt, ((0, Kp - K), (0, Np - N)))
    if Np != N:
        bias = jnp.pad(bias, (0, Np - N))
    b2 = bias.reshape(1, Np)

    m_blocks, n_blocks, k_blocks = Mp // tm, Np // tn, Kp // tk

    # Lead with the parallel axis that has more blocks so the megacore-sharded
    # axis on v7x (2 TCs) has >=2 blocks whenever possible.
    if n_blocks >= m_blocks:
        grid = (n_blocks, m_blocks, k_blocks)
        x_map = lambda j, i, k: (i, k)
        w_map = lambda j, i, k: (k, j)
        b_map = lambda j, i, k: (0, j)
        o_map = lambda j, i, k: (i, j)
    else:
        grid = (m_blocks, n_blocks, k_blocks)
        x_map = lambda i, j, k: (i, k)
        w_map = lambda i, j, k: (k, j)
        b_map = lambda i, j, k: (0, j)
        o_map = lambda i, j, k: (i, j)

    # VMEM budget: double-buffered x / W / out tiles + bias (all f32).
    vmem_bytes = 4 * (2 * tm * tk + 2 * tk * tn + 2 * tm * tn + 2 * tn)
    vmem_limit = int(min(max(vmem_bytes + (8 << 20), 32 << 20), 48 << 20))

    cost = pl.CostEstimate(
        flops=2 * Mp * Np * Kp,
        transcendentals=0,
        # x is re-streamed once per N tile, W once per M tile.
        bytes_accessed=4 * (Mp * Kp * n_blocks + Kp * Np * m_blocks
                            + Mp * Np + Np),
    )

    out = pl.pallas_call(
        _ffn_kernel,
        out_shape=jax.ShapeDtypeStruct((Mp, Np), jnp.float32),
        grid_spec=pltpu.PrefetchScalarGridSpec(
            num_scalar_prefetch=0,
            grid=grid,
            in_specs=[
                pl.BlockSpec((tm, tk), x_map),   # x tile
                pl.BlockSpec((tk, tn), w_map),   # W^T tile (K, N)
                pl.BlockSpec((1, tn), b_map),    # bias tile
            ],
            out_specs=pl.BlockSpec((tm, tn), o_map),
        ),
        compiler_params=pltpu.CompilerParams(
            dimension_semantics=("parallel", "parallel", "arbitrary"),
            vmem_limit_bytes=vmem_limit),
        cost_estimate=cost,
    )(x, wt, b2)

    if (Mp, Np) != (M, N):
        out = out[:M, :N]
    return out


if __name__ == "__main__":
    key = jax.random.PRNGKey(0)
    k_x, k_w, k_b = jax.random.split(key, 3)

    batch = 8
    input_size = 32
    output_size = 64

    x = jax.random.normal(k_x, (batch, input_size), dtype=jnp.float32)
    # Deterministic params mimicking nn.Linear init bounds (uniform +-1/sqrt(K))
    bound = 1.0 / (input_size ** 0.5)
    weight = jax.random.uniform(k_w, (output_size, input_size),
                                dtype=jnp.float32, minval=-bound, maxval=bound)
    bias = jax.random.uniform(k_b, (output_size,),
                              dtype=jnp.float32, minval=-bound, maxval=bound)

    out = bw_feedforward1(x, weight, bias)
    out = jax.block_until_ready(out)

    # Reference check in plain JAX
    ref = jnp.maximum(x @ weight.T + bias, 0.0)
    assert out.shape == (batch, output_size)
    assert jnp.allclose(out, ref, atol=1e-5, rtol=1e-5)

    print("KERNEL_OK")
</pallas_src>

<mosaic_0001>
module attributes {stable_mosaic.version = 11 : i64} {
  func.func @_ffn_kernel(%arg0: i32, %arg1: i32, %arg2: i32, %arg3: memref<8x128xf32, #tpu.memory_space<vmem>>, %arg4: memref<128x128xf32, #tpu.memory_space<vmem>>, %arg5: memref<1x128xf32, #tpu.memory_space<vmem>>, %arg6: memref<8x128xf32, #tpu.memory_space<vmem>>) attributes {dimension_semantics = [#tpu.dimension_semantics<parallel>, #tpu.dimension_semantics<parallel>, #tpu.dimension_semantics<arbitrary>], iteration_bounds = array<i64: 1, 1, 1>, scalar_prefetch = 0 : i64, scratch_operands = 0 : i64, tpu.core_type = #tpu.core_type<tc>, window_params = [{transform_indices = @transform_0, window_bounds = array<i64: 8, 128>}, {transform_indices = @transform_1, window_bounds = array<i64: 128, 128>}, {transform_indices = @transform_2, window_bounds = array<i64: 1, 128>}, {transform_indices = @transform_3, window_bounds = array<i64: 8, 128>}]} {
    %c0_i32 = arith.constant 0 : i32
    %0 = arith.cmpi eq, %arg2, %c0_i32 : i32
    %1 = arith.extui %0 : i1 to i32
    %c0_i32_0 = arith.constant 0 : i32
    %2 = arith.cmpi ne, %1, %c0_i32_0 : i32
    scf.if %2 {
      %cst_10 = arith.constant 0.000000e+00 : f32
      %12 = vector.broadcast %cst_10 : f32 to vector<8x128xf32>
      %c0_11 = arith.constant 0 : index
      %c0_12 = arith.constant 0 : index
      %13 = vector.load %arg6[%c0_11, %c0_12] : memref<8x128xf32, #tpu.memory_space<vmem>>, vector<8x128xf32>
      tpu.vector_store %arg6[%c0_11, %c0_12], %12 {strides = array<i32>} : memref<8x128xf32, #tpu.memory_space<vmem>>, vector<8x128xf32>,
    } else {
    }
    %c0 = arith.constant 0 : index
    %c0_1 = arith.constant 0 : index
    %3 = vector.load %arg6[%c0, %c0_1] : memref<8x128xf32, #tpu.memory_space<vmem>>, vector<8x128xf32>
    %c0_2 = arith.constant 0 : index
    %c0_3 = arith.constant 0 : index
    %4 = vector.load %arg3[%c0_2, %c0_3] : memref<8x128xf32, #tpu.memory_space<vmem>>, vector<8x128xf32>
    %c0_4 = arith.constant 0 : index
    %c0_5 = arith.constant 0 : index
    %5 = vector.load %arg4[%c0_4, %c0_5] : memref<128x128xf32, #tpu.memory_space<vmem>>, vector<128x128xf32>
    %cst = arith.constant dense<0.000000e+00> : vector<8x128xf32>
    %6 = tpu.matmul %4, %5, %cst {dimension_numbers = #tpu.dot_dimension_numbers<[1], [0], [0], [1], [0, 0, 1, 1], [], []>} : vector<8x128xf32>, vector<128x128xf32>, vector<8x128xf32> -> vector<8x128xf32>
    %7 = arith.addf %3, %6 : vector<8x128xf32>
    %c0_6 = arith.constant 0 : index
    %c0_7 = arith.constant 0 : index
    %8 = vector.load %arg6[%c0_6, %c0_7] : memref<8x128xf32, #tpu.memory_space<vmem>>, vector<8x128xf32>
    tpu.vector_store %arg6[%c0_6, %c0_7], %7 {strides = array<i32>} : memref<8x128xf32, #tpu.memory_space<vmem>>, vector<8x128xf32>,
    %c0_i32_8 = arith.constant 0 : i32
    %9 = arith.cmpi eq, %arg2, %c0_i32_8 : i32
    %10 = arith.extui %9 : i1 to i32
    %c0_i32_9 = arith.constant 0 : i32
    %11 = arith.cmpi ne, %10, %c0_i32_9 : i32
    scf.if %11 {
      %c0_10 = arith.constant 0 : index
      %c0_11 = arith.constant 0 : index
      %12 = vector.load %arg6[%c0_10, %c0_11] : memref<8x128xf32, #tpu.memory_space<vmem>>, vector<8x128xf32>
      %c0_12 = arith.constant 0 : index
      %c0_13 = arith.constant 0 : index
      %13 = vector.load %arg5[%c0_12, %c0_13] : memref<1x128xf32, #tpu.memory_space<vmem>>, vector<1x128xf32>
      %14 = vector.broadcast %13 : vector<1x128xf32> to vector<8x128xf32>
      %15 = arith.addf %12, %14 : vector<8x128xf32>
      %cst_14 = arith.constant 0.000000e+00 : f32
      %16 = vector.broadcast %cst_14 : f32 to vector<8x128xf32>
      %17 = arith.maximumf %15, %16 : vector<8x128xf32>
      %c0_15 = arith.constant 0 : index
      %c0_16 = arith.constant 0 : index
      %18 = vector.load %arg6[%c0_15, %c0_16] : memref<8x128xf32, #tpu.memory_space<vmem>>, vector<8x128xf32>
      tpu.vector_store %arg6[%c0_15, %c0_16], %17 {strides = array<i32>} : memref<8x128xf32, #tpu.memory_space<vmem>>, vector<8x128xf32>,
    } else {
    }
    return
  }
  func.func @transform_0(%arg0: i32, %arg1: i32, %arg2: i32) -> (i32, i32) {
    %c0_i32 = arith.constant 0 : i32
    return %arg1, %arg2 : i32, i32
  }
  func.func @transform_1(%arg0: i32, %arg1: i32, %arg2: i32) -> (i32, i32) {
    %c0_i32 = arith.constant 0 : i32
    return %arg2, %arg0 : i32, i32
  }
  func.func @transform_2(%arg0: i32, %arg1: i32, %arg2: i32) -> (i32, i32) {
    %c0_i32 = arith.constant 0 : i32
    %c0_i32_0 = arith.constant 0 : i32
    return %c0_i32, %arg0 : i32, i32
  }
  func.func @transform_3(%arg0: i32, %arg1: i32, %arg2: i32) -> (i32, i32) {
    %c0_i32 = arith.constant 0 : i32
    return %arg1, %arg0 : i32, i32
  }
}

</mosaic_0001>

<bundles_post_ra>
// kernel: bw_feedforward1.1
= control target key start
LH: loop header
LB: loop body
LE: loop exit
PB: predicated region body
PF: predicated region fallthrough
CT: control target
= control target key end

     0   :  { %v243_v3 = vmov 0.0|0.0   ;;  %vm244_vm0 = vmmov 0   ;;  %v245_v6 = vmov 0.0   ;;  %s333_s0 = inlined_call_operand.vmem [shape: f32[8,128], index: 0, kind: input, shape index: {}]   ;;  %s334_s1 = inlined_call_operand.vmem [shape: f32[128,128], index: 1, kind: input, shape index: {}]   ;;  %s335_s2 = inlined_call_operand.vmem [shape: f32[1,128], index: 2, kind: input, shape index: {}]   ;;  %s336_s3 = inlined_call_operand.hbm [shape: f32[8,128], index: 3, kind: output, shape index: {}]  }
   0x1   :  { %v22_v0 = vld [vmem:[%s334_s1] sm:$0xff]  ;;  %v23_v1 = vld [vmem:[%s334_s1 + $0x8] sm:$0xff]  ;;  %v24_v2 = vld [vmem:[%s334_s1 + $0x10] sm:$0xff]  ;;  %191 = vmatprep.subr.bf16.mxu0 %v243_v3  ;;  %188 = vmatprep.mubr.msk.f32.mxu0 %vm244_vm0, %v245_v6 }
   0x2   :  { %v192_v4 = vpack.c.bf16 %v23_v1, %v22_v0  ;;  %v25_v5 = vld [vmem:[%s334_s1 + $0x18] sm:$0xff]  ;;  %v26_v8 = vld [vmem:[%s334_s1 + $0x20] sm:$0xff]  ;;  %v27_v9 = vld [vmem:[%s334_s1 + $0x28] sm:$0xff] }
   0x3   :  { %v195_v7 = vpack.c.bf16 %v25_v5, %v24_v2 }
   0x4   :  { %193 = vmatpush3.bf16.msra.mxu0 %v192_v4 }
   0x5   :  { %194 = vmatprep.subr.bf16.mxu0 %v243_v3 }
   0x6   :  { %8 = vsyncpa [#allocation3], 0  ;;  %v198_v10 = vpack.c.bf16 %v27_v9, %v26_v8  ;;  %v28_v11 = vld [vmem:[%s334_s1 + $0x30] sm:$0xff]  ;;  %v29_v12 = vld [vmem:[%s334_s1 + $0x38] sm:$0xff]  ;;  %s246_s21 = smov [#allocation2]  }
   0x7   :  { %v201_v13 = vpack.c.bf16 %v29_v12, %v28_v11  ;;  %v30_v14 = vld [vmem:[%s334_s1 + $0x40] sm:$0xff]  ;;  %v31_v15 = vld [vmem:[%s334_s1 + $0x48] sm:$0xff]  ;;  %v32_v17 = vld [vmem:[%s334_s1 + $0x50] sm:$0xff]  ;;  %s130_s22 = sshll.u32 %s246_s21, 4  ;;  %s131_s22 = int_to_ptr.vmem [resolvable:$true] %s130_s22 }
   0x8   :  { %196 = vmatpush3.bf16.msra.mxu0 %v195_v7  ;;  %v204_v16 = vpack.c.bf16 %v31_v15, %v30_v14  ;;  %v33_v18 = vld [vmem:[%s334_s1 + $0x58] sm:$0xff]  ;;  %v34_v20 = vld [vmem:[%s334_s1 + $0x60] sm:$0xff]  ;;  %v35_v21 = vld [vmem:[%s334_s1 + $0x68] sm:$0xff]  ;;  %p224_p1 = scmp.lt.s32.totalorder %s131_s22, %s131_s22 }
   0x9   :  { %197 = vmatprep.subr.bf16.mxu0 %v243_v3  ;;  %v207_v19 = vpack.c.bf16 %v33_v18, %v32_v17  ;;  %v210_v22 = vpack.c.bf16 %v35_v21, %v34_v20  ;;  %v36_v23 = vld [vmem:[%s334_s1 + $0x70] sm:$0xff]  ;;  %v37_v24 = vld [vmem:[%s334_s1 + $0x78] sm:$0xff]  ;;  %v21_v26 = vld [vmem:[%s333_s0] sm:$0xff]  ;;  %s219_s1 = scalar_lea.vmem %s131_s22, 128 }
   0xa   :  { %v213_v25 = vpack.c.bf16 %v37_v24, %v36_v23  ;;  %v138_v28 = vld [vmem:[%s335_s2] ss:$0 sm:$0xff]  ;;  %p220_p0 = scmp.ne.s32.totalorder %s131_s22, %s219_s1  ;;  %p225_p2 = scmp.lt.s32.totalorder %s219_s1, %s219_s1 }
   0xc   :  { %199 = vmatpush3.bf16.msra.mxu0 %v198_v10  ;;  %p226_p3 = por %p225_p2, %p224_p1 }
   0xd   :  { %200 = vmatprep.subr.bf16.mxu0 %v243_v3 }
   0xe   :  { %p227_p4 = pnand %p226_p3, %p220_p0 }
  0x10   :  { %202 = vmatpush3.bf16.msra.mxu0 %v201_v13 }
  0x11   :  { %203 = vmatprep.subr.bf16.mxu0 %v243_v3 }
  0x14   :  { %205 = vmatpush3.bf16.msra.mxu0 %v204_v16 }
  0x15   :  { %206 = vmatprep.subr.bf16.mxu0 %v243_v3 }
  0x18   :  { %208 = vmatpush3.bf16.msra.mxu0 %v207_v19 }
  0x19   :  { %209 = vmatprep.subr.bf16.mxu0 %v243_v3 }
  0x1c   :  { %211 = vmatpush3.bf16.msra.mxu0 %v210_v22 }
  0x1d   :  { %212 = vmatprep.subr.bf16.mxu0 %v243_v3 }
  0x20   :  { %214 = vmatpush3.bf16.msra.mxu0 %v213_v25 }
  0x23   :  { %189 = vmatmul.mubr.f32.vlgmr.msra.gmra.mrb[0].mxu0 %v21_v26 }
  0xf6   :  { %v104_v27 = vpop.f32.mrb[0].mxu0 }
  0xf7   :  { %v190_v29 = vpop.f32.mrb[1].mxu0  ;;  %v121_v30 = vadd.f32 %v138_v28, %v104_v27 }
  0xf9   :  { %v122_v31 = vmax.f32 %v121_v30, 0.0 }
  0xfb   :  { %123 = vst [vmem:[#allocation2] sm:$0xff] %v122_v31 }
  0xfc   :  { %230 = shalt.err (!%p227_p4)
}
  0xfd   :  { %s231_s24 = scalar_lea.hbm %s336_s3, 128 }
  0xfe   :  { %p232_p5 = scmp.ne.s32.totalorder %s336_s3, %s231_s24  ;;  %p235_p6 = scmp.lt.u32.totalorder %s231_s24, %s336_s3 }
 0x100   :  { %p237_p7 = pnand %p235_p6, %p232_p5 }
 0x102   :  { %240 = shalt.err (!%p237_p7)
}
 0x103   :  { %133 = dma.vmem_to_hbm [thread:$0]  %s131_s22, 128, %s336_s3, [#allocation3]  }
 0x104   :  { %241 = dma.done.wait [#allocation3], 128  }
 0x105   :  { %242 = vsyncadd [#allocation3], 4294967168 }
 0x106   :  { %137 = vsyncpa [#allocation3], 1 }

</bundles_post_ra>
